<compile_context>
chip_gen: v5e
topology: v5e:2x2
jax: 0.10.0
libtpu: 0.0.40
codegen_flags: <defaults>
</compile_context>

<pallas_src>
import functools

import jax
import jax.numpy as jnp
from jax.experimental import pallas as pl
from jax.experimental.pallas import tpu as pltpu


def _leaky_relu(x, slope=0.1):
    return jnp.where(x > 0, x, slope * x)


def _round_up(n, m):
    return ((n + m - 1) // m) * m


def generator_mlp_kernel(x_ref,
                         w1_ref, b1_ref,
                         w2_ref, b2_ref,
                         w3_ref, b3_ref,
                         w4_ref, b4_ref,
                         o_ref):
    """One batch tile per grid step; the whole 4-layer MLP is fused here.

    x / weights arrive already in the matmul dtype (f32 or bf16); dots
    accumulate in f32 on the MXU; bias add + LeakyReLU run in f32 on the VPU.
    """
    mm_dtype = w1_ref.dtype

    h = jnp.dot(x_ref[...], w1_ref[...],
                preferred_element_type=jnp.float32) + b1_ref[...]
    h = _leaky_relu(h)

    h = jnp.dot(h.astype(mm_dtype), w2_ref[...],
                preferred_element_type=jnp.float32) + b2_ref[...]
    h = _leaky_relu(h)

    h = jnp.dot(h.astype(mm_dtype), w3_ref[...],
                preferred_element_type=jnp.float32) + b3_ref[...]
    h = _leaky_relu(h)

    h = jnp.dot(h.astype(mm_dtype), w4_ref[...],
                preferred_element_type=jnp.float32) + b4_ref[...]

    o_ref[...] = h.astype(o_ref.dtype)


@functools.partial(jax.jit, static_argnames=("tile_m", "matmul_dtype"))
def generator_forward(x, params, tile_m=None, matmul_dtype=jnp.bfloat16):
    """x: (B, feature_dim + latent_dim) float32.  params: dict of f32 W/b."""
    B, d_in = x.shape
    out_dtype = x.dtype

    w1, b1 = params["w1"], params["b1"]
    w2, b2 = params["w2"], params["b2"]
    w3, b3 = params["w3"], params["b3"]
    w4, b4 = params["w4"], params["b4"]
    label_dim = w4.shape[1]

    # --- batch-tile selection -------------------------------------------------
    # sublane granularity: 8 for 4-byte dtypes, 16 for bf16 operands.
    sub = 8 if jnp.dtype(matmul_dtype).itemsize == 4 else 16
    if tile_m is None:
        tile_m = min(256, _round_up(B, sub))   # single step for small batches
    tile_m = max(sub, _round_up(tile_m, sub))

    b_pad = _round_up(B, tile_m)
    d_in_pad = _round_up(d_in, 128)            # lane-dense K for layer 1
    out_pad = _round_up(label_dim, 128)        # lane-dense output stores

    # --- zero-padding + dtype casts (all cheap, fused by XLA) -----------------
    x_p = jnp.pad(x, ((0, b_pad - B), (0, d_in_pad - d_in))).astype(matmul_dtype)
    w1_p = jnp.pad(w1, ((0, d_in_pad - d_in), (0, 0))).astype(matmul_dtype)
    w2_p = w2.astype(matmul_dtype)
    w3_p = w3.astype(matmul_dtype)
    w4_p = jnp.pad(w4, ((0, 0), (0, out_pad - label_dim))).astype(matmul_dtype)
    b1_p = b1.astype(jnp.float32)
    b2_p = b2.astype(jnp.float32)
    b3_p = b3.astype(jnp.float32)
    b4_p = jnp.pad(b4, ((0, 0), (0, out_pad - label_dim))).astype(jnp.float32)

    grid = (b_pad // tile_m,)

    def full(shape):
        # Whole-array block, constant index across the batch-tile grid axis
        # (weights stay resident in VMEM; no re-DMA per step).
        return pl.BlockSpec(shape, lambda i: (0,) * len(shape))

    out = pl.pallas_call(
        generator_mlp_kernel,
        out_shape=jax.ShapeDtypeStruct((b_pad, out_pad), out_dtype),
        grid_spec=pltpu.PrefetchScalarGridSpec(
            num_scalar_prefetch=0,
            grid=grid,
            in_specs=[
                pl.BlockSpec((tile_m, d_in_pad), lambda i: (i, 0)),  # x tile
                full(w1_p.shape), full(b1_p.shape),
                full(w2_p.shape), full(b2_p.shape),
                full(w3_p.shape), full(b3_p.shape),
                full(w4_p.shape), full(b4_p.shape),
            ],
            out_specs=pl.BlockSpec((tile_m, out_pad), lambda i: (i, 0)),
        ),
        compiler_params=pltpu.CompilerParams(
            dimension_semantics=("parallel",),
        ),
    )(x_p, w1_p, b1_p, w2_p, b2_p, w3_p, b3_p, w4_p, b4_p)

    # slice padded batch rows / padded output lanes back off
    return out[:B, :label_dim]


def init_generator_params(key, label_dim, feature_dim, latent_dim):
    """Deterministic synthetic params; weights stored as (in, out)."""
    dims = [feature_dim + latent_dim, 256, 256, 128, label_dim]
    params = {}
    for li in range(4):
        key, kw, kb = jax.random.split(key, 3)
        fan_in, fan_out = dims[li], dims[li + 1]
        bound = 1.0 / jnp.sqrt(fan_in)  # matches torch nn.Linear default init
        params[f"w{li+1}"] = jax.random.uniform(
            kw, (fan_in, fan_out), jnp.float32, -bound, bound)
        params[f"b{li+1}"] = jax.random.uniform(
            kb, (1, fan_out), jnp.float32, -bound, bound)
    return params


def generator_reference(x, params):
    """Pure-JAX f32 reference for correctness checking."""
    h = x
    for li in range(1, 5):
        h = h @ params[f"w{li}"] + params[f"b{li}"]
        if li < 4:
            h = _leaky_relu(h)
    return h


if __name__ == "__main__":
    label_dim, feature_dim, latent_dim = 16, 24, 8
    d_in = feature_dim + latent_dim

    key = jax.random.PRNGKey(0)
    key, kx1, kx2 = jax.random.split(key, 3)
    params = init_generator_params(key, label_dim, feature_dim, latent_dim)

    # --- 1) tiny batch, exact f32 matmul path: strict check -------------------
    x = jax.random.normal(kx1, (16, d_in), jnp.float32)
    out_f32 = jax.block_until_ready(
        generator_forward(x, params, matmul_dtype=jnp.float32))
    ref = generator_reference(x, params)
    assert out_f32.shape == (16, label_dim)
    assert jnp.allclose(out_f32, ref, atol=1e-4, rtol=1e-4), "f32 mismatch"

    # --- 2) bf16 MXU fast path (default): loose check vs f32 reference --------
    out_bf16 = jax.block_until_ready(generator_forward(x, params))
    assert out_bf16.shape == (16, label_dim)
    assert jnp.allclose(out_bf16, ref, atol=1e-1, rtol=1e-1), "bf16 mismatch"

    # --- 3) multi-tile path with batch padding (B=40, tile_m=16 -> grid=(3,)) -
    x2 = jax.random.normal(kx2, (40, d_in), jnp.float32)
    out2 = jax.block_until_ready(
        generator_forward(x2, params, tile_m=16, matmul_dtype=jnp.float32))
    ref2 = generator_reference(x2, params)
    assert out2.shape == (40, label_dim)
    assert jnp.allclose(out2, ref2, atol=1e-4, rtol=1e-4), "tiled mismatch"

    # TODO(synk): sample_latent (torch.randn) is plain host-side RNG; done with
    # jax.random in the wrapper, not inside the kernel.
    print("KERNEL_OK")
</pallas_src>

<mosaic_0001>
module attributes {stable_mosaic.version = 11 : i64} {
  func.func @generator_mlp_kernel(%arg0: i32, %arg1: memref<16x128xf32, #tpu.memory_space<vmem>>, %arg2: memref<128x256xf32, #tpu.memory_space<vmem>>, %arg3: memref<1x256xf32, #tpu.memory_space<vmem>>, %arg4: memref<256x256xf32, #tpu.memory_space<vmem>>, %arg5: memref<1x256xf32, #tpu.memory_space<vmem>>, %arg6: memref<256x128xf32, #tpu.memory_space<vmem>>, %arg7: memref<1x128xf32, #tpu.memory_space<vmem>>, %arg8: memref<128x128xf32, #tpu.memory_space<vmem>>, %arg9: memref<1x128xf32, #tpu.memory_space<vmem>>, %arg10: memref<16x128xf32, #tpu.memory_space<vmem>>) attributes {dimension_semantics = [#tpu.dimension_semantics<parallel>], iteration_bounds = array<i64: 1>, scalar_prefetch = 0 : i64, scratch_operands = 0 : i64, tpu.core_type = #tpu.core_type<tc>, window_params = [{transform_indices = @transform_0, window_bounds = array<i64: 16, 128>}, {pipeline_mode = #tpu.pipeline_mode<synchronous>, transform_indices = @transform_1, window_bounds = array<i64: 128, 256>}, {pipeline_mode = #tpu.pipeline_mode<synchronous>, transform_indices = @transform_2, window_bounds = array<i64: 1, 256>}, {pipeline_mode = #tpu.pipeline_mode<synchronous>, transform_indices = @transform_3, window_bounds = array<i64: 256, 256>}, {pipeline_mode = #tpu.pipeline_mode<synchronous>, transform_indices = @transform_4, window_bounds = array<i64: 1, 256>}, {pipeline_mode = #tpu.pipeline_mode<synchronous>, transform_indices = @transform_5, window_bounds = array<i64: 256, 128>}, {pipeline_mode = #tpu.pipeline_mode<synchronous>, transform_indices = @transform_6, window_bounds = array<i64: 1, 128>}, {pipeline_mode = #tpu.pipeline_mode<synchronous>, transform_indices = @transform_7, window_bounds = array<i64: 128, 128>}, {pipeline_mode = #tpu.pipeline_mode<synchronous>, transform_indices = @transform_8, window_bounds = array<i64: 1, 128>}, {transform_indices = @transform_9, window_bounds = array<i64: 16, 128>}]} {
    %c0 = arith.constant 0 : index
    %c0_0 = arith.constant 0 : index
    %0 = vector.load %arg1[%c0, %c0_0] : memref<16x128xf32, #tpu.memory_space<vmem>>, vector<16x128xf32>
    %c0_1 = arith.constant 0 : index
    %c0_2 = arith.constant 0 : index
    %1 = vector.load %arg2[%c0_1, %c0_2] : memref<128x256xf32, #tpu.memory_space<vmem>>, vector<128x256xf32>
    %cst = arith.constant dense<0.000000e+00> : vector<16x256xf32>
    %2 = tpu.matmul %0, %1, %cst {dimension_numbers = #tpu.dot_dimension_numbers<[1], [0], [0], [1], [0, 0, 1, 1], [], []>} : vector<16x128xf32>, vector<128x256xf32>, vector<16x256xf32> -> vector<16x256xf32>
    %c0_3 = arith.constant 0 : index
    %c0_4 = arith.constant 0 : index
    %3 = vector.load %arg3[%c0_3, %c0_4] : memref<1x256xf32, #tpu.memory_space<vmem>>, vector<1x256xf32>
    %4 = vector.broadcast %3 : vector<1x256xf32> to vector<16x256xf32>
    %5 = arith.addf %2, %4 : vector<16x256xf32>
    %cst_5 = arith.constant 0.000000e+00 : f32
    %6 = vector.broadcast %cst_5 : f32 to vector<16x256xf32>
    %7 = arith.cmpf ogt, %5, %6 : vector<16x256xf32>
    %cst_6 = arith.constant 1.000000e-01 : f32
    %8 = vector.broadcast %cst_6 : f32 to vector<16x256xf32>
    %9 = arith.mulf %8, %5 : vector<16x256xf32>
    %10 = arith.select %7, %5, %9 : vector<16x256xi1>, vector<16x256xf32>
    %c0_7 = arith.constant 0 : index
    %c0_8 = arith.constant 0 : index
    %11 = vector.load %arg4[%c0_7, %c0_8] : memref<256x256xf32, #tpu.memory_space<vmem>>, vector<256x256xf32>
    %cst_9 = arith.constant dense<0.000000e+00> : vector<16x256xf32>
    %12 = tpu.matmul %10, %11, %cst_9 {dimension_numbers = #tpu.dot_dimension_numbers<[1], [0], [0], [1], [0, 0, 1, 1], [], []>} : vector<16x256xf32>, vector<256x256xf32>, vector<16x256xf32> -> vector<16x256xf32>
    %c0_10 = arith.constant 0 : index
    %c0_11 = arith.constant 0 : index
    %13 = vector.load %arg5[%c0_10, %c0_11] : memref<1x256xf32, #tpu.memory_space<vmem>>, vector<1x256xf32>
    %14 = vector.broadcast %13 : vector<1x256xf32> to vector<16x256xf32>
    %15 = arith.addf %12, %14 : vector<16x256xf32>
    %cst_12 = arith.constant 0.000000e+00 : f32
    %16 = vector.broadcast %cst_12 : f32 to vector<16x256xf32>
    %17 = arith.cmpf ogt, %15, %16 : vector<16x256xf32>
    %cst_13 = arith.constant 1.000000e-01 : f32
    %18 = vector.broadcast %cst_13 : f32 to vector<16x256xf32>
    %19 = arith.mulf %18, %15 : vector<16x256xf32>
    %20 = arith.select %17, %15, %19 : vector<16x256xi1>, vector<16x256xf32>
    %c0_14 = arith.constant 0 : index
    %c0_15 = arith.constant 0 : index
    %21 = vector.load %arg6[%c0_14, %c0_15] : memref<256x128xf32, #tpu.memory_space<vmem>>, vector<256x128xf32>
    %cst_16 = arith.constant dense<0.000000e+00> : vector<16x128xf32>
    %22 = tpu.matmul %20, %21, %cst_16 {dimension_numbers = #tpu.dot_dimension_numbers<[1], [0], [0], [1], [0, 0, 1, 1], [], []>} : vector<16x256xf32>, vector<256x128xf32>, vector<16x128xf32> -> vector<16x128xf32>
    %c0_17 = arith.constant 0 : index
    %c0_18 = arith.constant 0 : index
    %23 = vector.load %arg7[%c0_17, %c0_18] : memref<1x128xf32, #tpu.memory_space<vmem>>, vector<1x128xf32>
    %24 = vector.broadcast %23 : vector<1x128xf32> to vector<16x128xf32>
    %25 = arith.addf %22, %24 : vector<16x128xf32>
    %cst_19 = arith.constant 0.000000e+00 : f32
    %26 = vector.broadcast %cst_19 : f32 to vector<16x128xf32>
    %27 = arith.cmpf ogt, %25, %26 : vector<16x128xf32>
    %cst_20 = arith.constant 1.000000e-01 : f32
    %28 = vector.broadcast %cst_20 : f32 to vector<16x128xf32>
    %29 = arith.mulf %28, %25 : vector<16x128xf32>
    %30 = arith.select %27, %25, %29 : vector<16x128xi1>, vector<16x128xf32>
    %c0_21 = arith.constant 0 : index
    %c0_22 = arith.constant 0 : index
    %31 = vector.load %arg8[%c0_21, %c0_22] : memref<128x128xf32, #tpu.memory_space<vmem>>, vector<128x128xf32>
    %cst_23 = arith.constant dense<0.000000e+00> : vector<16x128xf32>
    %32 = tpu.matmul %30, %31, %cst_23 {dimension_numbers = #tpu.dot_dimension_numbers<[1], [0], [0], [1], [0, 0, 1, 1], [], []>} : vector<16x128xf32>, vector<128x128xf32>, vector<16x128xf32> -> vector<16x128xf32>
    %c0_24 = arith.constant 0 : index
    %c0_25 = arith.constant 0 : index
    %33 = vector.load %arg9[%c0_24, %c0_25] : memref<1x128xf32, #tpu.memory_space<vmem>>, vector<1x128xf32>
    %34 = vector.broadcast %33 : vector<1x128xf32> to vector<16x128xf32>
    %35 = arith.addf %32, %34 : vector<16x128xf32>
    %c0_26 = arith.constant 0 : index
    %c0_27 = arith.constant 0 : index
    %36 = vector.load %arg10[%c0_26, %c0_27] : memref<16x128xf32, #tpu.memory_space<vmem>>, vector<16x128xf32>
    tpu.vector_store %arg10[%c0_26, %c0_27], %35 {strides = array<i32>} : memref<16x128xf32, #tpu.memory_space<vmem>>, vector<16x128xf32>,
    return
  }
  func.func @transform_0(%arg0: i32) -> (i32, i32) {
    %c0_i32 = arith.constant 0 : i32
    %c0_i32_0 = arith.constant 0 : i32
    return %arg0, %c0_i32 : i32, i32
  }
  func.func @transform_1(%arg0: i32) -> (i32, i32) {
    %c0_i32 = arith.constant 0 : i32
    %c0_i32_0 = arith.constant 0 : i32
    %c0_i32_1 = arith.constant 0 : i32
    return %c0_i32, %c0_i32_0 : i32, i32
  }
  func.func @transform_2(%arg0: i32) -> (i32, i32) {
    %c0_i32 = arith.constant 0 : i32
    %c0_i32_0 = arith.constant 0 : i32
    %c0_i32_1 = arith.constant 0 : i32
    return %c0_i32, %c0_i32_0 : i32, i32
  }
  func.func @transform_3(%arg0: i32) -> (i32, i32) {
    %c0_i32 = arith.constant 0 : i32
    %c0_i32_0 = arith.constant 0 : i32
    %c0_i32_1 = arith.constant 0 : i32
    return %c0_i32, %c0_i32_0 : i32, i32
  }
  func.func @transform_4(%arg0: i32) -> (i32, i32) {
    %c0_i32 = arith.constant 0 : i32
    %c0_i32_0 = arith.constant 0 : i32
    %c0_i32_1 = arith.constant 0 : i32
    return %c0_i32, %c0_i32_0 : i32, i32
  }
  func.func @transform_5(%arg0: i32) -> (i32, i32) {
    %c0_i32 = arith.constant 0 : i32
    %c0_i32_0 = arith.constant 0 : i32
    %c0_i32_1 = arith.constant 0 : i32
    return %c0_i32, %c0_i32_0 : i32, i32
  }
  func.func @transform_6(%arg0: i32) -> (i32, i32) {
    %c0_i32 = arith.constant 0 : i32
    %c0_i32_0 = arith.constant 0 : i32
    %c0_i32_1 = arith.constant 0 : i32
    return %c0_i32, %c0_i32_0 : i32, i32
  }
  func.func @transform_7(%arg0: i32) -> (i32, i32) {
    %c0_i32 = arith.constant 0 : i32
    %c0_i32_0 = arith.constant 0 : i32
    %c0_i32_1 = arith.constant 0 : i32
    return %c0_i32, %c0_i32_0 : i32, i32
  }
  func.func @transform_8(%arg0: i32) -> (i32, i32) {
    %c0_i32 = arith.constant 0 : i32
    %c0_i32_0 = arith.constant 0 : i32
    %c0_i32_1 = arith.constant 0 : i32
    return %c0_i32, %c0_i32_0 : i32, i32
  }
  func.func @transform_9(%arg0: i32) -> (i32, i32) {
    %c0_i32 = arith.constant 0 : i32
    %c0_i32_0 = arith.constant 0 : i32
    return %arg0, %c0_i32 : i32, i32
  }
}

</mosaic_0001>

<bundles_post_ra>
// kernel: generator_forward.1
= control target key start
LH: loop header
LB: loop body
LE: loop exit
PB: predicated region body
PF: predicated region fallthrough
CT: control target
= control target key end

     0   :  { %14 = vsyncpa [#allocation3], 0  ;;  %s967_s0 = inlined_call_operand.vmem [shape: f32[16,128], index: 0, kind: input, shape index: {}]   ;;  %s968_s1 = inlined_call_operand.vmem [shape: f32[128,256], index: 1, kind: input, shape index: {}]   ;;  %s969_s2 = inlined_call_operand.vmem [shape: f32[1,256], index: 2, kind: input, shape index: {}]   ;;  %s970_s3 = inlined_call_operand.vmem [shape: f32[256,256], index: 3, kind: input, shape index: {}]   ;;  %s971_s4 = inlined_call_operand.vmem [shape: f32[1,256], index: 4, kind: input, shape index: {}]   ;;  %s972_s5 = inlined_call_operand.hbm [shape: f32[256,128], index: 5, kind: input, shape index: {}]   ;;  %s973_s6 = inlined_call_operand.vmem [shape: f32[1,128], index: 6, kind: input, shape index: {}]   ;;  %s974_s7 = inlined_call_operand.vmem [shape: f32[128,128], index: 7, kind: input, shape index: {}]   ;;  %s975_s8 = inlined_call_operand.vmem [shape: f32[1,128], index: 8, kind: input, shape index: {}]   ;;  %s976_s9 = inlined_call_operand.hbm [shape: f32[16,128], index: 9, kind: output, shape index: {}]  }
   0x1   :  { %15 = vsyncpa [#allocation4], 0  ;;  %s30_s11 = sshll.u32 %s972_s5, 4  ;;  %s547_s12 = smov [#allocation2]   ;;  %s31_s11 = int_to_ptr.hbm [resolvable:$true] %s30_s11 }
   0x2   :  { %s32_s13 = sshll.u32 %s547_s12, 4  ;;  %s548_s14 = smov 128   ;;  %s33_s13 = int_to_ptr.vmem [resolvable:$true] %s32_s13 }
   0x3   :  { %s549_s15 = smov 8  }
   0x4   :  { %38 = dma.hbm_to_vmem [thread:$0]  %s31_s11, 4096, %s33_s13, [#allocation3], %s548_s14, %s548_s14, %s549_s15  }
   0x5   :  { %543 = dma.done.wait [#allocation3], 4096  }
   0x6   :  { %544 = vsyncadd [#allocation3], 4294963200  ;;  %v81_v0 = vld [vmem:[%s968_s1 + $0xf0] sm:$0xff]  ;;  %v82_v1 = vld [vmem:[%s968_s1 + $0xf8] sm:$0xff]  ;;  %s460_s18 = sshll.u32 %s976_s9, 4  ;;  %s461_s18 = int_to_ptr.hbm [resolvable:$true] %s460_s18 }
   0x7   :  { %v79_v2 = vld [vmem:[%s968_s1 + $0xe0] sm:$0xff]  ;;  %89 = vmatpush.msra.mxu0 %v81_v0  ;;  %112 = vmatpush.msra.mxu1 %v82_v1  ;;  %v80_v3 = vld [vmem:[%s968_s1 + $0xe8] sm:$0xff]  ;;  %v77_v4 = vld [vmem:[%s968_s1 + $0xd0] sm:$0xff] }
   0x8   :  { %v78_v5 = vld [vmem:[%s968_s1 + $0xd8] sm:$0xff]  ;;  %v75_v6 = vld [vmem:[%s968_s1 + $0xc0] sm:$0xff]  ;;  %v76_v7 = vld [vmem:[%s968_s1 + $0xc8] sm:$0xff] }
   0x9   :  { %90 = vmatpush.msra.mxu0 %v79_v2  ;;  %113 = vmatpush.msra.mxu1 %v80_v3  ;;  %v73_v8 = vld [vmem:[%s968_s1 + $0xb0] sm:$0xff]  ;;  %v74_v9 = vld [vmem:[%s968_s1 + $0xb8] sm:$0xff]  ;;  %v71_v10 = vld [vmem:[%s968_s1 + $0xa0] sm:$0xff] }
   0xa   :  { %v72_v11 = vld [vmem:[%s968_s1 + $0xa8] sm:$0xff]  ;;  %v69_v12 = vld [vmem:[%s968_s1 + $0x90] sm:$0xff]  ;;  %v70_v13 = vld [vmem:[%s968_s1 + $0x98] sm:$0xff] }
   0xb   :  { %91 = vmatpush.msra.mxu0 %v77_v4  ;;  %114 = vmatpush.msra.mxu1 %v78_v5  ;;  %v177_v14 = vld [vmem:[%s970_s3 + $0xf0] sm:$0xff]  ;;  %v67_v16 = vld [vmem:[%s968_s1 + $0x80] sm:$0xff]  ;;  %v68_v17 = vld [vmem:[%s968_s1 + $0x88] sm:$0xff] }
   0xc   :  { %v209_v15 = vld [vmem:[%s970_s3 + $0x1f0] sm:$0xff]  ;;  %217 = vmatpush.msra.mxu2 %v177_v14  ;;  %v175_v18 = vld [vmem:[%s970_s3 + $0xe0] sm:$0xff]  ;;  %v66_v21 = vld [vmem:[%s968_s1 + $0x78] sm:$0xff] }
   0xd   :  { %92 = vmatpush.msra.mxu0 %v75_v6  ;;  %115 = vmatpush.msra.mxu1 %v76_v7  ;;  %v65_v19 = vld [vmem:[%s968_s1 + $0x70] sm:$0xff]  ;;  %v207_v20 = vld [vmem:[%s970_s3 + $0x1e0] sm:$0xff]  ;;  %v64_v27 = vld [vmem:[%s968_s1 + $0x68] sm:$0xff] }
   0xe   :  { %240 = vmatpush.msra.mxu3 %v209_v15  ;;  %218 = vmatpush.msra.mxu2 %v175_v18  ;;  %v173_v22 = vld [vmem:[%s970_s3 + $0xd0] sm:$0xff]  ;;  %v171_v24 = vld [vmem:[%s970_s3 + $0xc0] sm:$0xff]  ;;  %v62_v31 = vld [vmem:[%s968_s1 + $0x58] sm:$0xff] }
   0xf   :  { %93 = vmatpush.msra.mxu0 %v73_v8  ;;  %116 = vmatpush.msra.mxu1 %v74_v9  ;;  %v205_v23 = vld [vmem:[%s970_s3 + $0x1d0] sm:$0xff]  ;;  %v203_v25 = vld [vmem:[%s970_s3 + $0x1c0] sm:$0xff]  ;;  %v60_v35 = vld [vmem:[%s968_s1 + $0x48] sm:$0xff] }
  0x10   :  { %241 = vmatpush.msra.mxu3 %v207_v20  ;;  %v63_v26 = vld [vmem:[%s968_s1 + $0x60] sm:$0xff]  ;;  %219 = vmatpush.msra.mxu2 %v173_v22  ;;  %v169_v28 = vld [vmem:[%s970_s3 + $0xb0] sm:$0xff]  ;;  %v58_v39 = vld [vmem:[%s968_s1 + $0x38] sm:$0xff] }
  0x11   :  { %94 = vmatpush.msra.mxu0 %v71_v10  ;;  %117 = vmatpush.msra.mxu1 %v72_v11  ;;  %v201_v29 = vld [vmem:[%s970_s3 + $0x1b0] sm:$0xff]  ;;  %v167_v32 = vld [vmem:[%s970_s3 + $0xa0] sm:$0xff]  ;;  %v56_v43 = vld [vmem:[%s968_s1 + $0x28] sm:$0xff] }
  0x12   :  { %242 = vmatpush.msra.mxu3 %v205_v23  ;;  %v61_v30 = vld [vmem:[%s968_s1 + $0x50] sm:$0xff]  ;;  %220 = vmatpush.msra.mxu2 %v171_v24  ;;  %v199_v33 = vld [vmem:[%s970_s3 + $0x1a0] sm:$0xff]  ;;  %v54_v47 = vld [vmem:[%s968_s1 + $0x18] sm:$0xff] }
  0x13   :  { %95 = vmatpush.msra.mxu0 %v69_v12  ;;  %118 = vmatpush.msra.mxu1 %v70_v13  ;;  %v59_v34 = vld [vmem:[%s968_s1 + $0x40] sm:$0xff]  ;;  %v165_v36 = vld [vmem:[%s970_s3 + $0x90] sm:$0xff]  ;;  %v52_v51 = vld [vmem:[%s968_s1 + $0x8] sm:$0xff] }
  0x14   :  { %243 = vmatpush.msra.mxu3 %v203_v25  ;;  %221 = vmatpush.msra.mxu2 %v169_v28  ;;  %v197_v37 = vld [vmem:[%s970_s3 + $0x190] sm:$0xff]  ;;  %v163_v40 = vld [vmem:[%s970_s3 + $0x80] sm:$0xff]  ;;  %v178_v53 = vld [vmem:[%s970_s3 + $0xf8] sm:$0xff] }
  0x15   :  { %96 = vmatpush.msra.mxu0 %v67_v16  ;;  %119 = vmatpush.msra.mxu1 %v68_v17  ;;  %v57_v38 = vld [vmem:[%s968_s1 + $0x30] sm:$0xff]  ;;  %v195_v41 = vld [vmem:[%s970_s3 + $0x180] sm:$0xff]  ;;  %v210_v54 = vld [vmem:[%s970_s3 + $0x1f8] sm:$0xff] }
  0x16   :  { %244 = vmatpush.msra.mxu3 %v201_v29  ;;  %222 = vmatpush.msra.mxu2 %v167_v32  ;;  %v55_v42 = vld [vmem:[%s968_s1 + $0x20] sm:$0xff]  ;;  %v161_v44 = vld [vmem:[%s970_s3 + $0x70] sm:$0xff]  ;;  %v176_v57 = vld [vmem:[%s970_s3 + $0xe8] sm:$0xff] }
  0x17   :  { %97 = vmatpush.msra.mxu0 %v65_v19  ;;  %120 = vmatpush.msra.mxu1 %v66_v21  ;;  %v193_v45 = vld [vmem:[%s970_s3 + $0x170] sm:$0xff]  ;;  %v159_v48 = vld [vmem:[%s970_s3 + $0x60] sm:$0xff]  ;;  %v208_v58 = vld [vmem:[%s970_s3 + $0x1e8] sm:$0xff] }
  0x18   :  { %245 = vmatpush.msra.mxu3 %v199_v33  ;;  %223 = vmatpush.msra.mxu2 %v165_v36  ;;  %v53_v46 = vld [vmem:[%s968_s1 + $0x10] sm:$0xff]  ;;  %v191_v49 = vld [vmem:[%s970_s3 + $0x160] sm:$0xff]  ;;  %v174_v61 = vld [vmem:[%s970_s3 + $0xd8] sm:$0xff] }
  0x19   :  { %98 = vmatpush.msra.mxu0 %v63_v26  ;;  %121 = vmatpush.msra.mxu1 %v64_v27  ;;  %v51_v50 = vld [vmem:[%s968_s1] sm:$0xff]  ;;  %v157_v55 = vld [vmem:[%s970_s3 + $0x50] sm:$0xff]  ;;  %v206_v62 = vld [vmem:[%s970_s3 + $0x1d8] sm:$0xff] }
  0x1a   :  { %246 = vmatpush.msra.mxu3 %v197_v37  ;;  %224 = vmatpush.msra.mxu2 %v163_v40  ;;  %v49_v52 = vld [vmem:[%s967_s0] sm:$0xff]  ;;  %v189_v56 = vld [vmem:[%s970_s3 + $0x150] sm:$0xff]  ;;  %v172_v1 = vld [vmem:[%s970_s3 + $0xc8] sm:$0xff] }
  0x1b   :  { %99 = vmatpush.msra.mxu0 %v61_v30  ;;  %122 = vmatpush.msra.mxu1 %v62_v31  ;;  %v155_v59 = vld [vmem:[%s970_s3 + $0x40] sm:$0xff]  ;;  %v153_v63 = vld [vmem:[%s970_s3 + $0x30] sm:$0xff]  ;;  %v204_v2 = vld [vmem:[%s970_s3 + $0x1c8] sm:$0xff] }
  0x1c   :  { %247 = vmatpush.msra.mxu3 %v195_v41  ;;  %225 = vmatpush.msra.mxu2 %v161_v44  ;;  %v187_v60 = vld [vmem:[%s970_s3 + $0x140] sm:$0xff]  ;;  %v185_v0 = vld [vmem:[%s970_s3 + $0x130] sm:$0xff]  ;;  %v50_v3 = vld [vmem:[%s967_s0 + $0x8] sm:$0xff] }
  0x1d   :  { %100 = vmatpush.msra.mxu0 %v59_v34  ;;  %123 = vmatpush.msra.mxu1 %v60_v35  ;;  %v170_v4 = vld [vmem:[%s970_s3 + $0xb8] sm:$0xff]  ;;  %v168_v6 = vld [vmem:[%s970_s3 + $0xa8] sm:$0xff]  ;;  %v151_v22 = vld [vmem:[%s970_s3 + $0x20] sm:$0xff] }
  0x1e   :  { %248 = vmatpush.msra.mxu3 %v193_v45  ;;  %226 = vmatpush.msra.mxu2 %v159_v48  ;;  %v202_v5 = vld [vmem:[%s970_s3 + $0x1b8] sm:$0xff]  ;;  %v200_v7 = vld [vmem:[%s970_s3 + $0x1a8] sm:$0xff]  ;;  %v183_v23 = vld [vmem:[%s970_s3 + $0x120] sm:$0xff] }
  0x1f   :  { %101 = vmatpush.msra.mxu0 %v57_v38  ;;  %124 = vmatpush.msra.mxu1 %v58_v39  ;;  %v166_v8 = vld [vmem:[%s970_s3 + $0x98] sm:$0xff]  ;;  %v164_v10 = vld [vmem:[%s970_s3 + $0x88] sm:$0xff]  ;;  %v149_v26 = vld [vmem:[%s970_s3 + $0x10] sm:$0xff] }
  0x20   :  { %249 = vmatpush.msra.mxu3 %v191_v49  ;;  %227 = vmatpush.msra.mxu2 %v157_v55  ;;  %v198_v9 = vld [vmem:[%s970_s3 + $0x198] sm:$0xff]  ;;  %v196_v11 = vld [vmem:[%s970_s3 + $0x188] sm:$0xff]  ;;  %v181_v27 = vld [vmem:[%s970_s3 + $0x110] sm:$0xff] }
  0x21   :  { %102 = vmatpush.msra.mxu0 %v55_v42  ;;  %125 = vmatpush.msra.mxu1 %v56_v43  ;;  %v162_v12 = vld [vmem:[%s970_s3 + $0x78] sm:$0xff]  ;;  %v160_v14 = vld [vmem:[%s970_s3 + $0x68] sm:$0xff]  ;;  %v147_v30 = vld [vmem:[%s970_s3] sm:$0xff] }
  0x22   :  { %250 = vmatpush.msra.mxu3 %v189_v56  ;;  %228 = vmatpush.msra.mxu2 %v155_v59  ;;  %v194_v13 = vld [vmem:[%s970_s3 + $0x178] sm:$0xff]  ;;  %v192_v15 = vld [vmem:[%s970_s3 + $0x168] sm:$0xff]  ;;  %v179_v31 = vld [vmem:[%s970_s3 + $0x100] sm:$0xff] }
  0x23   :  { %103 = vmatpush.msra.mxu0 %v53_v46  ;;  %126 = vmatpush.msra.mxu1 %v54_v47  ;;  %v158_v16 = vld [vmem:[%s970_s3 + $0x58] sm:$0xff]  ;;  %v156_v18 = vld [vmem:[%s970_s3 + $0x48] sm:$0xff]  ;;  %v351_v35 = vld [vmem:[#allocation2 + $0xf0] sm:$0xff] }
  0x24   :  { %251 = vmatpush.msra.mxu3 %v187_v60  ;;  %229 = vmatpush.msra.mxu2 %v153_v63  ;;  %v190_v17 = vld [vmem:[%s970_s3 + $0x158] sm:$0xff]  ;;  %v188_v19 = vld [vmem:[%s970_s3 + $0x148] sm:$0xff]  ;;  %v335_v37 = vld [vmem:[#allocation2 + $0x70] sm:$0xff] }
  0x25   :  { %104 = vmatpush.msra.mxu0 %v51_v50  ;;  %127 = vmatpush.msra.mxu1 %v52_v51  ;;  %v154_v20 = vld [vmem:[%s970_s3 + $0x38] sm:$0xff]  ;;  %v152_v24 = vld [vmem:[%s970_s3 + $0x28] sm:$0xff]  ;;  %v349_v40 = vld [vmem:[#allocation2 + $0xe0] sm:$0xff] }
  0x26   :  { %105 = vmatmul.f32.vlgmr.msra.gmra.mxu0 %v49_v52  ;;  %128 = vmatmul.f32.vlgmr.msra.gmra.mxu1 %v49_v52  ;;  %v186_v21 = vld [vmem:[%s970_s3 + $0x138] sm:$0xff]  ;;  %v184_v25 = vld [vmem:[%s970_s3 + $0x128] sm:$0xff]  ;;  %v333_v41 = vld [vmem:[#allocation2 + $0x60] sm:$0xff] }
  0x27   :  { %263 = vmatpush.msrb.mxu0 %v178_v53  ;;  %286 = vmatpush.msrb.mxu1 %v210_v54  ;;  %v150_v28 = vld [vmem:[%s970_s3 + $0x18] sm:$0xff]  ;;  %v148_v32 = vld [vmem:[%s970_s3 + $0x8] sm:$0xff]  ;;  %v347_v44 = vld [vmem:[#allocation2 + $0xd0] sm:$0xff] }
  0x28   :  { %252 = vmatpush.msra.mxu3 %v185_v0  ;;  %230 = vmatpush.msra.mxu2 %v151_v22  ;;  %v182_v29 = vld [vmem:[%s970_s3 + $0x118] sm:$0xff]  ;;  %v180_v33 = vld [vmem:[%s970_s3 + $0x108] sm:$0xff]  ;;  %v331_v45 = vld [vmem:[#allocation2 + $0x50] sm:$0xff] }
  0x29   :  { %264 = vmatpush.msrb.mxu0 %v176_v57  ;;  %287 = vmatpush.msrb.mxu1 %v208_v58  ;;  %v352_v34 = vld [vmem:[#allocation2 + $0xf8] sm:$0xff]  ;;  %v350_v38 = vld [vmem:[#allocation2 + $0xe8] sm:$0xff]  ;;  %v83_v47 = vld [vmem:[%s969_s2] sm:$0x3] }
  0x2a   :  { %253 = vmatpush.msra.mxu3 %v183_v23  ;;  %231 = vmatpush.msra.mxu2 %v149_v26  ;;  %v336_v36 = vld [vmem:[#allocation2 + $0x78] sm:$0xff]  ;;  %v334_v39 = vld [vmem:[#allocation2 + $0x68] sm:$0xff]  ;;  %v345_v49 = vld [vmem:[#allocation2 + $0xc0] sm:$0xff]  ;;  %v85_v51 = vperm.slane %v83_v47, 0  ;;  %v86_v52 = vperm.slane %v83_v47, 1 }
  0x2b   :  { %265 = vmatpush.msrb.mxu0 %v174_v61  ;;  %288 = vmatpush.msrb.mxu1 %v206_v62  ;;  %v348_v42 = vld [vmem:[#allocation2 + $0xd8] sm:$0xff]  ;;  %v346_v46 = vld [vmem:[#allocation2 + $0xc8] sm:$0xff]  ;;  %v329_v50 = vld [vmem:[#allocation2 + $0x40] sm:$0xff] }
  0x2c   :  { %254 = vmatpush.msra.mxu3 %v181_v27  ;;  %232 = vmatpush.msra.mxu2 %v147_v30  ;;  %v332_v43 = vld [vmem:[#allocation2 + $0x58] sm:$0xff]  ;;  %v330_v48 = vld [vmem:[#allocation2 + $0x48] sm:$0xff]  ;;  %v343_v55 = vld [vmem:[#allocation2 + $0xb0] sm:$0xff] }
  0x2d   :  { %266 = vmatpush.msrb.mxu0 %v172_v1  ;;  %289 = vmatpush.msrb.mxu1 %v204_v2  ;;  %v344_v53 = vld [vmem:[#allocation2 + $0xb8] sm:$0xff]  ;;  %v342_v60 = vld [vmem:[#allocation2 + $0xa8] sm:$0xff]  ;;  %v341_v1 = vld [vmem:[#allocation2 + $0xa0] sm:$0xff] }
  0x2e   :  { %108 = vmatmul.f32.gmra.mxu0 %v50_v3  ;;  %131 = vmatmul.f32.gmra.mxu1 %v50_v3  ;;  %v328_v54 = vld [vmem:[#allocation2 + $0x38] sm:$0xff]  ;;  %v423_v22 = vld [vmem:[%s974_s7 + $0x70] sm:$0xff]  ;;  %v422_v23 = vld [vmem:[%s974_s7 + $0x68] sm:$0xff] }
  0x2f   :  { %267 = vmatpush.msrb.mxu0 %v170_v4  ;;  %290 = vmatpush.msrb.mxu1 %v202_v5  ;;  %v420_v26 = vld [vmem:[%s974_s7 + $0x58] sm:$0xff] }
  0x30   :  { %255 = vmatpush.msra.mxu3 %v179_v31  ;;  %357 = vmatpush.msrb.mxu2 %v336_v36  ;;  %v416_v36 = vld [vmem:[%s974_s7 + $0x38] sm:$0xff] }
  0x31   :  { %268 = vmatpush.msrb.mxu0 %v168_v6  ;;  %291 = vmatpush.msrb.mxu1 %v200_v7 }
  0x32   :  { %380 = vmatpush.msrb.mxu3 %v352_v34  ;;  %358 = vmatpush.msrb.mxu2 %v335_v37 }
  0x33   :  { %269 = vmatpush.msrb.mxu0 %v166_v8  ;;  %292 = vmatpush.msrb.mxu1 %v198_v9 }
  0x34   :  { %381 = vmatpush.msrb.mxu3 %v351_v35  ;;  %359 = vmatpush.msrb.mxu2 %v334_v39 }
  0x35   :  { %270 = vmatpush.msrb.mxu0 %v164_v10  ;;  %293 = vmatpush.msrb.mxu1 %v196_v11  ;;  %v327_v10 = vld [vmem:[#allocation2 + $0x30] sm:$0xff]  ;;  %v340_v11 = vld [vmem:[#allocation2 + $0x98] sm:$0xff] }
  0x36   :  { %382 = vmatpush.msrb.mxu3 %v350_v38  ;;  %360 = vmatpush.msrb.mxu2 %v333_v41 }
  0x37   :  { %271 = vmatpush.msrb.mxu0 %v162_v12  ;;  %294 = vmatpush.msrb.mxu1 %v194_v13  ;;  %v326_v12 = vld [vmem:[#allocation2 + $0x28] sm:$0xff]  ;;  %v339_v13 = vld [vmem:[#allocation2 + $0x90] sm:$0xff] }
  0x38   :  { %383 = vmatpush.msrb.mxu3 %v349_v40  ;;  %361 = vmatpush.msrb.mxu2 %v332_v43 }
  0x39   :  { %272 = vmatpush.msrb.mxu0 %v160_v14  ;;  %295 = vmatpush.msrb.mxu1 %v192_v15  ;;  %v325_v14 = vld [vmem:[#allocation2 + $0x20] sm:$0xff]  ;;  %v338_v15 = vld [vmem:[#allocation2 + $0x88] sm:$0xff] }
  0x3a   :  { %384 = vmatpush.msrb.mxu3 %v348_v42  ;;  %362 = vmatpush.msrb.mxu2 %v331_v45 }
  0x3b   :  { %273 = vmatpush.msrb.mxu0 %v158_v16  ;;  %296 = vmatpush.msrb.mxu1 %v190_v17  ;;  %v324_v16 = vld [vmem:[#allocation2 + $0x18] sm:$0xff]  ;;  %v337_v17 = vld [vmem:[#allocation2 + $0x80] sm:$0xff] }
  0x3c   :  { %385 = vmatpush.msrb.mxu3 %v347_v44  ;;  %363 = vmatpush.msrb.mxu2 %v330_v48 }
  0x3d   :  { %274 = vmatpush.msrb.mxu0 %v156_v18  ;;  %297 = vmatpush.msrb.mxu1 %v188_v19  ;;  %v323_v18 = vld [vmem:[#allocation2 + $0x10] sm:$0xff]  ;;  %v322_v19 = vld [vmem:[#allocation2 + $0x8] sm:$0xff] }
  0x3e   :  { %386 = vmatpush.msrb.mxu3 %v346_v46  ;;  %364 = vmatpush.msrb.mxu2 %v329_v50 }
  0x3f   :  { %275 = vmatpush.msrb.mxu0 %v154_v20  ;;  %298 = vmatpush.msrb.mxu1 %v186_v21  ;;  %v321_v20 = vld [vmem:[#allocation2] sm:$0xff]  ;;  %v424_v21 = vld [vmem:[%s974_s7 + $0x78] sm:$0xff] }
  0x40   :  { %387 = vmatpush.msrb.mxu3 %v345_v49  ;;  %365 = vmatpush.msrb.mxu2 %v328_v54 }
  0x41   :  { %276 = vmatpush.msrb.mxu0 %v152_v24  ;;  %299 = vmatpush.msrb.mxu1 %v184_v25  ;;  %v421_v24 = vld [vmem:[%s974_s7 + $0x60] sm:$0xff] }
  0x42   :  { %388 = vmatpush.msrb.mxu3 %v344_v53  ;;  %366 = vmatpush.msrb.mxu2 %v327_v10  ;;  %v211_v25 = vld [vmem:[%s971_s4] sm:$0x3] }
  0x43   :  { %277 = vmatpush.msrb.mxu0 %v150_v28  ;;  %300 = vmatpush.msrb.mxu1 %v182_v29  ;;  %v214_v27 = vperm.slane %v211_v25, 1  ;;  %v419_v28 = vld [vmem:[%s974_s7 + $0x50] sm:$0xff]  ;;  %v418_v29 = vld [vmem:[%s974_s7 + $0x48] sm:$0xff]  ;;  %v213_v34 = vperm.slane %v211_v25, 0 }
  0x44   :  { %389 = vmatpush.msrb.mxu3 %v343_v55  ;;  %367 = vmatpush.msrb.mxu2 %v326_v12 }
  0x45   :  { %278 = vmatpush.msrb.mxu0 %v148_v32  ;;  %301 = vmatpush.msrb.mxu1 %v180_v33  ;;  %v417_v33 = vld [vmem:[%s974_s7 + $0x40] sm:$0xff] }
  0x46   :  { %390 = vmatpush.msrb.mxu3 %v342_v60  ;;  %368 = vmatpush.msrb.mxu2 %v325_v14  ;;  %v412_v60 = vld [vmem:[%s974_s7 + $0x18] sm:$0xff] }
  0x47   :  { %429 = vmatpush.msra.mxu0 %v424_v21  ;;  %473 = vmatpush.msra.mxu1 %v424_v21 }
  0x48   :  { %391 = vmatpush.msrb.mxu3 %v341_v1  ;;  %369 = vmatpush.msrb.mxu2 %v324_v16 }
  0x49   :  { %430 = vmatpush.msra.mxu0 %v423_v22  ;;  %474 = vmatpush.msra.mxu1 %v423_v22 }
  0x4a   :  { %392 = vmatpush.msrb.mxu3 %v340_v11  ;;  %370 = vmatpush.msrb.mxu2 %v323_v18 }
  0x4b   :  { %431 = vmatpush.msra.mxu0 %v422_v23  ;;  %475 = vmatpush.msra.mxu1 %v422_v23 }
  0x4c   :  { %393 = vmatpush.msrb.mxu3 %v339_v13  ;;  %371 = vmatpush.msrb.mxu2 %v322_v19  ;;  %v494_v13 = vld [vmem:[%s975_s8] ss:$0 sm:$0xff] }
  0x4d   :  { %432 = vmatpush.msra.mxu0 %v421_v24  ;;  %476 = vmatpush.msra.mxu1 %v421_v24 }
  0x4e   :  { %394 = vmatpush.msrb.mxu3 %v338_v15  ;;  %372 = vmatpush.msrb.mxu2 %v321_v20 }
  0x4f   :  { %433 = vmatpush.msra.mxu0 %v420_v26  ;;  %477 = vmatpush.msra.mxu1 %v420_v26 }
  0x50   :  { %395 = vmatpush.msrb.mxu3 %v337_v17 }
  0x51   :  { %434 = vmatpush.msra.mxu0 %v419_v28  ;;  %478 = vmatpush.msra.mxu1 %v419_v28 }
  0x53   :  { %435 = vmatpush.msra.mxu0 %v418_v29  ;;  %479 = vmatpush.msra.mxu1 %v418_v29 }
  0x55   :  { %436 = vmatpush.msra.mxu0 %v417_v33  ;;  %480 = vmatpush.msra.mxu1 %v417_v33 }
  0x57   :  { %437 = vmatpush.msra.mxu0 %v416_v36  ;;  %481 = vmatpush.msra.mxu1 %v416_v36 }
  0xa3   :  { %v106_v56 = vpop.f32.mrf.mxu0  ;;  %v129_v57 = vpop.f32.mrf.mxu1 }
  0xa4   :  { %v107_v58 = vadd.f32 %v106_v56, %v85_v51  ;;  %v130_v59 = vadd.f32 %v129_v57, %v86_v52  ;;  %v415_v57 = vld [vmem:[%s974_s7 + $0x30] sm:$0xff] }
  0xa5   :  { %438 = vmatpush.msra.mxu0 %v415_v57  ;;  %482 = vmatpush.msra.mxu1 %v415_v57 }
  0xa6   :  { %vm135_vm0 = vcmp.gt.f32.partialorder %v107_v58, 0.0  ;;  %v139_v61 = vmul.f32 0.1, %v107_v58  ;;  %vm136_vm1 = vcmp.gt.f32.partialorder %v130_v59, 0.0  ;;  %v140_v62 = vmul.f32 0.1, %v130_v59 }
  0xa8   :  { %v143_v63 = vsel %vm135_vm0, %v107_v58, %v139_v61  ;;  %v144_v0 = vsel %vm136_vm1, %v130_v59, %v140_v62  ;;  %v414_v58 = vld [vmem:[%s974_s7 + $0x28] sm:$0xff]  ;;  %v413_v59 = vld [vmem:[%s974_s7 + $0x20] sm:$0xff]  ;;  %v411_v61 = vld [vmem:[%s974_s7 + $0x10] sm:$0xff] }
  0xa9   :  { %233 = vmatmul.f32.vlgmr.msra.gmra.mxu2 %v143_v63  ;;  %256 = vmatmul.f32.vlgmr.msra.gmra.mxu3 %v144_v0  ;;  %v410_v62 = vld [vmem:[%s974_s7 + $0x8] sm:$0xff] }
  0xaa   :  { %279 = vmatmul.f32.vlgmr.msrb.gmra.mxu0 %v143_v63  ;;  %302 = vmatmul.f32.vlgmr.msrb.gmra.mxu1 %v144_v0  ;;  %v409_v63 = vld [vmem:[%s974_s7] sm:$0xff] }
  0xab   :  { %v109_v2 = vpop.f32.mrf.mxu0  ;;  %v132_v3 = vpop.f32.mrf.mxu1  ;;  %439 = vmatpush.msra.mxu0 %v414_v58  ;;  %483 = vmatpush.msra.mxu1 %v414_v58  ;;  %v493_v0 = vld [vmem:[%s973_s6] ss:$0 sm:$0xff]  ;;  %s550_s6 = smov [#allocation5]  }
  0xac   :  { %v110_v4 = vadd.f32 %v109_v2, %v85_v51  ;;  %v133_v5 = vadd.f32 %v132_v3, %v86_v52  ;;  %s458_s0 = sshll.u32 %s550_s6, 4  ;;  %s459_s0 = int_to_ptr.vmem [resolvable:$true] %s458_s0 }
  0xad   :  { %440 = vmatpush.msra.mxu0 %v413_v59  ;;  %484 = vmatpush.msra.mxu1 %v413_v59 }
  0xae   :  { %vm137_vm2 = vcmp.gt.f32.partialorder %v110_v4, 0.0  ;;  %v141_v6 = vmul.f32 0.1, %v110_v4  ;;  %vm138_vm3 = vcmp.gt.f32.partialorder %v133_v5, 0.0  ;;  %v142_v7 = vmul.f32 0.1, %v133_v5 }
  0xaf   :  { %441 = vmatpush.msra.mxu0 %v412_v60  ;;  %485 = vmatpush.msra.mxu1 %v412_v60 }
  0xb0   :  { %v145_v8 = vsel %vm137_vm2, %v110_v4, %v141_v6  ;;  %v146_v9 = vsel %vm138_vm3, %v133_v5, %v142_v7 }
  0xb1   :  { %236 = vmatmul.f32.gmra.mxu2 %v145_v8  ;;  %259 = vmatmul.f32.gmra.mxu3 %v146_v9 }
  0xb2   :  { %282 = vmatmul.f32.gmra.mxu0 %v145_v8  ;;  %305 = vmatmul.f32.gmra.mxu1 %v146_v9 }
  0xb3   :  { %442 = vmatpush.msra.mxu0 %v411_v61  ;;  %486 = vmatpush.msra.mxu1 %v411_v61 }
  0xb5   :  { %443 = vmatpush.msra.mxu0 %v410_v62  ;;  %487 = vmatpush.msra.mxu1 %v410_v62 }
  0xb7   :  { %444 = vmatpush.msra.mxu0 %v409_v63  ;;  %488 = vmatpush.msra.mxu1 %v409_v63 }
 0x127   :  { %v280_v30 = vpop.f32.mrf.mxu0  ;;  %v303_v31 = vpop.f32.mrf.mxu1 }
 0x128   :  { %v281_v32 = vadd.f32 %v280_v30, %v214_v27 }
 0x12a   :  { %v304_v35 = vadd.f32 %v303_v31, %v281_v32 }
 0x12c   :  { %v314_v37 = vmul.f32 0.1, %v304_v35  ;;  %v234_v38 = vpop.f32.mrf.mxu2  ;;  %v257_v39 = vpop.f32.mrf.mxu3  ;;  %vm310_vm4 = vcmp.gt.f32.partialorder %v304_v35, 0.0 }
 0x12d   :  { %v235_v40 = vadd.f32 %v234_v38, %v213_v34 }
 0x12e   :  { %v318_v41 = vsel %vm310_vm4, %v304_v35, %v314_v37 }
 0x12f   :  { %v258_v42 = vadd.f32 %v257_v39, %v235_v40  ;;  %v283_v43 = vpop.f32.mrf.mxu0  ;;  %396 = vmatmul.f32.vlgmr.msrb.gmra.mxu3 %v318_v41  ;;  %v306_v46 = vpop.f32.mrf.mxu1 }
 0x130   :  { %v284_v44 = vadd.f32 %v283_v43, %v214_v27 }
 0x131   :  { %v313_v45 = vmul.f32 0.1, %v258_v42  ;;  %vm309_vm5 = vcmp.gt.f32.partialorder %v258_v42, 0.0 }
 0x132   :  { %v307_v47 = vadd.f32 %v306_v46, %v284_v44 }
 0x133   :  { %v317_v48 = vsel %vm309_vm5, %v258_v42, %v313_v45 }
 0x134   :  { %v237_v49 = vpop.f32.mrf.mxu2  ;;  %373 = vmatmul.f32.vlgmr.msrb.gmra.mxu2 %v317_v48  ;;  %vm312_vm6 = vcmp.gt.f32.partialorder %v307_v47, 0.0  ;;  %v316_v50 = vmul.f32 0.1, %v307_v47  ;;  %v260_v52 = vpop.f32.mrf.mxu3 }
 0x135   :  { %v238_v51 = vadd.f32 %v237_v49, %v213_v34 }
 0x136   :  { %v320_v53 = vsel %vm312_vm6, %v307_v47, %v316_v50 }
 0x137   :  { %v261_v54 = vadd.f32 %v260_v52, %v238_v51  ;;  %399 = vmatmul.f32.gmra.mxu3 %v320_v53 }
 0x139   :  { %vm311_vm7 = vcmp.gt.f32.partialorder %v261_v54, 0.0  ;;  %v315_v55 = vmul.f32 0.1, %v261_v54 }
 0x13b   :  { %v319_v56 = vsel %vm311_vm7, %v261_v54, %v315_v55 }
 0x13c   :  { %376 = vmatmul.f32.gmra.mxu2 %v319_v56 }
 0x1b2   :  { %v397_v1 = vpop.f32.mrf.mxu3 }
 0x1b7   :  { %v374_v2 = vpop.f32.mrf.mxu2 }
 0x1b8   :  { %v375_v3 = vadd.f32 %v493_v0, %v374_v2 }
 0x1ba   :  { %v398_v4 = vadd.f32 %v397_v1, %v375_v3  ;;  %v400_v9 = vpop.f32.mrf.mxu3 }
 0x1bc   :  { %v405_v5 = vmul.f32 0.1, %v398_v4  ;;  %vm403_vm8 = vcmp.gt.f32.partialorder %v398_v4, 0.0 }
 0x1be   :  { %v407_v6 = vsel %vm403_vm8, %v398_v4, %v405_v5 }
 0x1bf   :  { %v377_v7 = vpop.f32.mrf.mxu2  ;;  %445 = vmatmul.f32.vlgmr.msra.gmra.mxu0 %v407_v6 }
 0x1c0   :  { %v378_v8 = vadd.f32 %v493_v0, %v377_v7 }
 0x1c2   :  { %v401_v10 = vadd.f32 %v400_v9, %v378_v8 }
 0x1c4   :  { %v406_v11 = vmul.f32 0.1, %v401_v10  ;;  %vm404_vm9 = vcmp.gt.f32.partialorder %v401_v10, 0.0 }
 0x1c6   :  { %v408_v12 = vsel %vm404_vm9, %v401_v10, %v406_v11 }
 0x1c7   :  { %448 = vmatmul.f32.vlgmr.msra.gmra.mxu1 %v408_v12 }
 0x23c   :  { %v446_v14 = vpop.f32.mrf.mxu0 }
 0x23d   :  { %v447_v15 = vadd.f32 %v494_v13, %v446_v14 }
 0x23f   :  { %452 = vst [vmem:[#allocation5] sm:$0xff] %v447_v15 }
 0x244   :  { %v449_v16 = vpop.f32.mrf.mxu1 }
 0x245   :  { %v450_v17 = vadd.f32 %v494_v13, %v449_v16 }
 0x247   :  { %453 = vst [vmem:[#allocation5 + $0x8] sm:$0xff] %v450_v17 }
 0x248   :  { %466 = dma.vmem_to_hbm [thread:$0]  %s459_s0, 256, %s461_s18, [#allocation4], %s548_s14, %s548_s14, %s549_s15  }
 0x249   :  { %545 = dma.done.wait [#allocation4], 256  }
 0x24a   :  { %546 = vsyncadd [#allocation4], 4294967040 }
 0x24b   :  { %471 = vsyncpa [#allocation3], 1 }
 0x24c   :  { %472 = vsyncpa [#allocation4], 1 }

</bundles_post_ra>
